<compile_context>
chip_gen: v6e
topology: v6e:2x2x1
jax: 0.10.0
libtpu: 0.0.40
codegen_flags: <defaults>
</compile_context>

<pallas_src>
import functools
import math

import jax
import jax.numpy as jnp
from jax import lax
from jax.experimental import pallas as pl
from jax.experimental.pallas import tpu as pltpu


def _round_up(v, m):
    return (v + m - 1) // m * m


# --------------------------------------------------------------------------------------
# support = x @ W   (row-tiled, bf16 MXU operands, f32 accumulation, bf16 output)
# --------------------------------------------------------------------------------------
def _support_kernel(x_ref, w_ref, out_ref):
    out_ref[...] = jnp.dot(
        x_ref[...].astype(jnp.bfloat16),
        w_ref[...].astype(jnp.bfloat16),
        preferred_element_type=jnp.float32,
    ).astype(out_ref.dtype)


def _support_matmul(x, w, *, block_m, out_dtype=jnp.bfloat16):
    Np, Dp = x.shape
    F = w.shape[1]
    grid = (Np // block_m,)
    vmem = 2 * (block_m * Dp * x.dtype.itemsize
                + Dp * F * w.dtype.itemsize
                + block_m * F * jnp.dtype(out_dtype).itemsize) + (4 << 20)
    return pl.pallas_call(
        _support_kernel,
        out_shape=jax.ShapeDtypeStruct((Np, F), out_dtype),
        grid_spec=pltpu.PrefetchScalarGridSpec(
            num_scalar_prefetch=0,
            grid=grid,
            in_specs=[
                pl.BlockSpec((block_m, Dp), lambda i: (i, 0)),
                pl.BlockSpec((Dp, F), lambda i: (0, 0)),
            ],
            out_specs=pl.BlockSpec((block_m, F), lambda i: (i, 0)),
        ),
        compiler_params=pltpu.CompilerParams(
            dimension_semantics=("parallel",),
            vmem_limit_bytes=int(min(vmem, 64 << 20)),
        ),
    )(x, w)


# --------------------------------------------------------------------------------------
# One GCN layer:  act(adj @ support + b)
#   grid = (row blocks of adj [parallel], reduction over adj columns [arbitrary])
#   support is VMEM-resident (constant index_map); adj blocks stream + double-buffer.
# --------------------------------------------------------------------------------------
def _gcn_layer_kernel(adj_ref, s_ref, b_ref, out_ref, acc_ref, *,
                      tk, valid_cols, activation):
    k = pl.program_id(1)

    @pl.when(k == 0)
    def _init():
        acc_ref[...] = jnp.zeros_like(acc_ref)

    start = pl.multiple_of(k * tk, tk)
    s_blk = s_ref[pl.ds(start, tk), :]                        # (tk, F) bf16, VMEM-resident
    acc_ref[...] += jnp.dot(adj_ref[...], s_blk,
                            preferred_element_type=jnp.float32)

    @pl.when(k == pl.num_programs(1) - 1)
    def _finalize():
        y = acc_ref[...] + b_ref[...]                         # bias added once, f32
        if activation == "relu":
            out_ref[...] = jnp.maximum(y, 0.0).astype(out_ref.dtype)
        else:  # masked, numerically-stable softmax over the first `valid_cols` lanes
            col = lax.broadcasted_iota(jnp.int32, y.shape, 1)
            y = jnp.where(col < valid_cols, y, -1e30)         # padded class lanes -> -inf-ish
            m = jnp.max(y, axis=-1, keepdims=True)
            e = jnp.exp(y - m)
            denom = jnp.sum(e, axis=-1, keepdims=True)
            out_ref[...] = (e * pl.reciprocal(denom, approx=True)).astype(out_ref.dtype)


def _gcn_layer(adj, s, b, *, block_m, block_k, activation, valid_cols, out_dtype):
    Np = adj.shape[0]
    F = s.shape[1]
    grid = (Np // block_m, Np // block_k)
    kernel = functools.partial(_gcn_layer_kernel, tk=block_k,
                               valid_cols=valid_cols, activation=activation)
    vmem = (2 * block_m * block_k * adj.dtype.itemsize        # adj tile, double-buffered
            + 2 * Np * F * s.dtype.itemsize                   # resident support
            + 2 * F * 4                                       # bias
            + 2 * block_m * F * jnp.dtype(out_dtype).itemsize # output block
            + block_m * F * 4)                                # f32 accumulator scratch
    vmem = int(min(vmem * 5 // 4 + (4 << 20), 64 << 20))
    return pl.pallas_call(
        kernel,
        out_shape=jax.ShapeDtypeStruct((Np, F), out_dtype),
        grid_spec=pltpu.PrefetchScalarGridSpec(
            num_scalar_prefetch=0,
            grid=grid,
            in_specs=[
                pl.BlockSpec((block_m, block_k), lambda i, k: (i, k)),  # adj tile
                pl.BlockSpec((Np, F), lambda i, k: (0, 0)),             # support (resident)
                pl.BlockSpec((1, F), lambda i, k: (0, 0)),              # bias
            ],
            out_specs=pl.BlockSpec((block_m, F), lambda i, k: (i, 0)),
            scratch_shapes=[pltpu.VMEM((block_m, F), jnp.float32)],
        ),
        compiler_params=pltpu.CompilerParams(
            dimension_semantics=("parallel", "arbitrary"),
            vmem_limit_bytes=vmem,
        ),
    )(adj, s, b)


# --------------------------------------------------------------------------------------
# Full GCN forward
# --------------------------------------------------------------------------------------
def gcn_forward(x, adj, w1, b1, w2, b2, *, block=256):
    N, D = x.shape
    Z = w1.shape[1]
    C = w2.shape[1]

    # Tile sizes: 128-aligned, capped by the (padded) node count.
    blk = min(block, _round_up(N, 128))
    blk = max(128, (blk // 128) * 128)
    Np = _round_up(N, blk)
    Dp = _round_up(D, 128)
    Zp = _round_up(Z, 128)
    Cp = _round_up(C, 128)

    f32 = jnp.float32
    xp = jnp.pad(x.astype(f32), ((0, Np - N), (0, Dp - D)))
    adjp = jnp.pad(adj.astype(f32), ((0, Np - N), (0, Np - N))).astype(jnp.bfloat16)
    w1p = jnp.pad(w1.astype(f32), ((0, Dp - D), (0, Zp - Z)))
    w2p = jnp.pad(w2.astype(f32), ((0, Zp - Z), (0, Cp - C)))
    b1p = jnp.pad(b1.reshape(1, -1).astype(f32), ((0, 0), (0, Zp - Z)))
    b2p = jnp.pad(b2.reshape(1, -1).astype(f32), ((0, 0), (0, Cp - C)))

    # ----- layer 1: h = relu(adj @ (x @ W1) + b1) -----
    s1 = _support_matmul(xp, w1p, block_m=blk)                        # [Np, Zp] bf16
    h = _gcn_layer(adjp, s1, b1p, block_m=blk, block_k=blk,
                   activation="relu", valid_cols=Zp, out_dtype=jnp.bfloat16)

    # Dropout: module evaluated in inference mode (training=False) -> identity.
    # TODO(synk): training-mode dropout would use pltpu.prng_seed / prng_random_bits.

    # ----- layer 2: out = softmax(adj @ (h @ W2) + b2) -----
    s2 = _support_matmul(h, w2p, block_m=blk)                         # [Np, Cp] bf16
    out_p = _gcn_layer(adjp, s2, b2p, block_m=blk, block_k=blk,
                       activation="softmax", valid_cols=C, out_dtype=jnp.float32)
    return out_p[:N, :C]


def init_gcn_params(key, D, Z, C):
    """Matches GCN_layer.reset_param: U(-1/sqrt(D_out), 1/sqrt(D_out))."""
    k1, k2, k3, k4 = jax.random.split(key, 4)
    std1 = 1.0 / math.sqrt(Z)
    std2 = 1.0 / math.sqrt(C)
    w1 = jax.random.uniform(k1, (D, Z), jnp.float32, -std1, std1)
    b1 = jax.random.uniform(k2, (Z,), jnp.float32, -std1, std1)
    w2 = jax.random.uniform(k3, (Z, C), jnp.float32, -std2, std2)
    b2 = jax.random.uniform(k4, (C,), jnp.float32, -std2, std2)
    return w1, b1, w2, b2


if __name__ == "__main__":
    # Small synthetic graph: N nodes, D input features, Z hidden, C classes.
    N, D, Z, C = 8, 16, 32, 4

    key = jax.random.PRNGKey(0)
    kx, kadj, kparam = jax.random.split(key, 3)

    x = jax.random.normal(kx, (N, D), jnp.float32)

    # Symmetric row-normalized adjacency with self loops (dense).
    a = (jax.random.uniform(kadj, (N, N)) < 0.4).astype(jnp.float32)
    a = jnp.maximum(a, a.T) + jnp.eye(N, dtype=jnp.float32)
    adj = a / jnp.sum(a, axis=-1, keepdims=True)

    w1, b1, w2, b2 = init_gcn_params(kparam, D, Z, C)

    out = gcn_forward(x, adj, w1, b1, w2, b2)
    out = jax.block_until_ready(out)

    # Pure-JAX f32 reference (loose tolerance: kernel uses bf16 matmul operands).
    ref_h = jnp.maximum(adj @ (x @ w1) + b1, 0.0)
    ref = jax.nn.softmax(adj @ (ref_h @ w2) + b2, axis=-1)

    assert out.shape == (N, C)
    assert jnp.allclose(jnp.sum(out, axis=-1), 1.0, atol=5e-3)
    assert float(jnp.max(jnp.abs(out - ref))) < 3e-2, float(jnp.max(jnp.abs(out - ref)))

    print("KERNEL_OK")
</pallas_src>

<mosaic_0001>
module attributes {stable_mosaic.version = 11 : i64} {
  func.func @_support_kernel(%arg0: i32, %arg1: memref<128x128xf32, #tpu.memory_space<vmem>>, %arg2: memref<128x128xf32, #tpu.memory_space<vmem>>, %arg3: memref<128x128xbf16, #tpu.memory_space<vmem>>) attributes {dimension_semantics = [#tpu.dimension_semantics<parallel>], iteration_bounds = array<i64: 1>, scalar_prefetch = 0 : i64, scratch_operands = 0 : i64, tpu.core_type = #tpu.core_type<tc>, window_params = [{transform_indices = @transform_0, window_bounds = array<i64: 128, 128>}, {pipeline_mode = #tpu.pipeline_mode<synchronous>, transform_indices = @transform_1, window_bounds = array<i64: 128, 128>}, {transform_indices = @transform_2, window_bounds = array<i64: 128, 128>}]} {
    %c0 = arith.constant 0 : index
    %c0_0 = arith.constant 0 : index
    %0 = vector.load %arg1[%c0, %c0_0] : memref<128x128xf32, #tpu.memory_space<vmem>>, vector<128x128xf32>
    %1 = arith.truncf %0 : vector<128x128xf32> to vector<128x128xbf16>
    %c0_1 = arith.constant 0 : index
    %c0_2 = arith.constant 0 : index
    %2 = vector.load %arg2[%c0_1, %c0_2] : memref<128x128xf32, #tpu.memory_space<vmem>>, vector<128x128xf32>
    %3 = arith.truncf %2 : vector<128x128xf32> to vector<128x128xbf16>
    %cst = arith.constant dense<0.000000e+00> : vector<128x128xf32>
    %4 = tpu.matmul %1, %3, %cst {dimension_numbers = #tpu.dot_dimension_numbers<[1], [0], [0], [1], [0, 0, 1, 1], [], []>} : vector<128x128xbf16>, vector<128x128xbf16>, vector<128x128xf32> -> vector<128x128xf32>
    %5 = arith.truncf %4 : vector<128x128xf32> to vector<128x128xbf16>
    %c0_3 = arith.constant 0 : index
    %c0_4 = arith.constant 0 : index
    %6 = vector.load %arg3[%c0_3, %c0_4] : memref<128x128xbf16, #tpu.memory_space<vmem>>, vector<128x128xbf16>
    tpu.vector_store %arg3[%c0_3, %c0_4], %5 {strides = array<i32>} : memref<128x128xbf16, #tpu.memory_space<vmem>>, vector<128x128xbf16>,
    return
  }
  func.func @transform_0(%arg0: i32) -> (i32, i32) {
    %c0_i32 = arith.constant 0 : i32
    %c0_i32_0 = arith.constant 0 : i32
    return %arg0, %c0_i32 : i32, i32
  }
  func.func @transform_1(%arg0: i32) -> (i32, i32) {
    %c0_i32 = arith.constant 0 : i32
    %c0_i32_0 = arith.constant 0 : i32
    %c0_i32_1 = arith.constant 0 : i32
    return %c0_i32, %c0_i32_0 : i32, i32
  }
  func.func @transform_2(%arg0: i32) -> (i32, i32) {
    %c0_i32 = arith.constant 0 : i32
    %c0_i32_0 = arith.constant 0 : i32
    return %arg0, %c0_i32 : i32, i32
  }
}

</mosaic_0001>

<bundles_post_ra>
// kernel: tpu_custom_call.1
= control target key start
LH: loop header
LB: loop body
LE: loop exit
PB: predicated region body
PF: predicated region fallthrough
CT: control target
= control target key end

     0   :  { %7 = vsyncpa [#allocation3], 0  ;;  %s531_s0 = inlined_call_operand.hbm [shape: f32[128,128], index: 0, kind: input, shape index: {}]   ;;  %s532_s1 = inlined_call_operand.hbm [shape: f32[128,128], index: 1, kind: input, shape index: {}]   ;;  %s533_s2 = inlined_call_operand.hbm [shape: bf16[128,128], index: 2, kind: output, shape index: {}]  }
   0x1   :  { %8 = vsyncpa [#allocation6], 0 }
   0x2   :  { %9 = vsyncpa [#allocation4], 0  ;;  %s500_s9 = smov [#allocation2]  }
   0x3   :  { %s15_s10 = sshll.u32 %s500_s9, 4  ;;  %s16_s10 = int_to_ptr.vmem [resolvable:$true] %s15_s10 }
   0x4   :  { %s442_s11 = scalar_lea.vmem %s16_s10, 2048  ;;  %p447_p1 = scmp.lt.s32.totalorder %s16_s10, %s16_s10 }
   0x5   :  { %p443_p0 = scmp.ne.s32.totalorder %s16_s10, %s442_s11  ;;  %p448_p2 = scmp.lt.s32.totalorder %s442_s11, %s442_s11 }
   0x7   :  { %p449_p3 = por %p448_p2, %p447_p1 }
   0x9   :  { %p450_p4 = pnand %p449_p3, %p443_p0 }
   0xb   :  { %453 = shalt.err (!%p450_p4)
}
   0xc   :  { %s501_s12 = smov 128   ;;  %s502_s13 = smov 8  }
   0xd   :  { %21 = dma.hbm_to_vmem [thread:$0]  %s531_s0, 2048, %s16_s10, [#allocation3], %s501_s12, %s501_s12, %s502_s13  }
   0xe   :  { %s503_s16 = smov [#allocation5]  }
   0xf   :  { %s27_s17 = sshll.u32 %s503_s16, 4  ;;  %s28_s17 = int_to_ptr.vmem [resolvable:$true] %s27_s17 }
  0x10   :  { %s462_s18 = scalar_lea.vmem %s28_s17, 2048  ;;  %p467_p6 = scmp.lt.s32.totalorder %s28_s17, %s28_s17 }
  0x11   :  { %p463_p5 = scmp.ne.s32.totalorder %s28_s17, %s462_s18  ;;  %p468_p7 = scmp.lt.s32.totalorder %s462_s18, %s462_s18 }
  0x13   :  { %p469_p8 = por %p468_p7, %p467_p6 }
  0x15   :  { %p470_p9 = pnand %p469_p8, %p463_p5 }
  0x17   :  { %473 = shalt.err (!%p470_p9)
}
  0x18   :  { %33 = dma.hbm_to_vmem [thread:$0]  %s532_s1, 2048, %s28_s17, [#allocation6], %s501_s12, %s501_s12, %s502_s13  }
  0x19   :  { %494 = dma.done.wait [#allocation3], 2048  }
  0x1a   :  { %495 = vsyncadd [#allocation3], 4294965248 }
  0x1b   :  { %496 = dma.done.wait [#allocation6], 2048  }
  0x1c   :  { %497 = vsyncadd [#allocation6], 4294965248  ;;  %v79_v0 = vld [vmem:[#allocation5 + $0x70] sm:$0xff]  ;;  %v80_v1 = vld [vmem:[#allocation5 + $0x78] sm:$0xff]  ;;  %s504_s0 = smov [#allocation7]  }
  0x1d   :  { %v77_v2 = vld [vmem:[#allocation5 + $0x60] sm:$0xff]  ;;  %v88_v3 = vpack.c.bf16 %v80_v1, %v79_v0  ;;  %v78_v4 = vld [vmem:[#allocation5 + $0x68] sm:$0xff]  ;;  %v75_v6 = vld [vmem:[#allocation5 + $0x50] sm:$0xff]  ;;  %s271_s1 = sshll.u32 %s504_s0, 4  ;;  %s272_s1 = int_to_ptr.vmem [resolvable:$true] %s271_s1 }
  0x1e   :  { %v87_v5 = vpack.c.bf16 %v78_v4, %v77_v2  ;;  %v76_v7 = vld [vmem:[#allocation5 + $0x58] sm:$0xff]  ;;  %v73_v9 = vld [vmem:[#allocation5 + $0x40] sm:$0xff]  ;;  %v42_v11 = vld [vmem:[#allocation2 + $0x8] sm:$0xff]  ;;  %s474_s21 = scalar_lea.vmem %s272_s1, 1024  ;;  %p479_p11 = scmp.lt.s32.totalorder %s272_s1, %s272_s1 }
  0x1f   :  { %379 = vmatprep.subr.bf16.mxu0 %v88_v3  ;;  %411 = vmatprep.subr.bf16.mxu1 %v88_v3  ;;  %v86_v8 = vpack.c.bf16 %v76_v7, %v75_v6  ;;  %v41_v10 = vld [vmem:[#allocation2] sm:$0xff]  ;;  %v74_v12 = vld [vmem:[#allocation5 + $0x48] sm:$0xff]  ;;  %v71_v18 = vld [vmem:[#allocation5 + $0x30] sm:$0xff]  ;;  %p475_p10 = scmp.ne.s32.totalorder %s272_s1, %s474_s21  ;;  %p480_p12 = scmp.lt.s32.totalorder %s474_s21, %s474_s21 }
  0x20   :  { %380 = vmatpush3.bf16.msra.mxu0 %v88_v3  ;;  %419 = vmatpush3.bf16.msra.mxu1 %v88_v3  ;;  %v57_v13 = vpack.c.bf16 %v42_v11, %v41_v10  ;;  %v49_v14 = vld [vmem:[#allocation2 + $0x40] sm:$0xff]  ;;  %v50_v15 = vld [vmem:[#allocation2 + $0x48] sm:$0xff]  ;;  %v85_v17 = vpack.c.bf16 %v74_v12, %v73_v9  ;;  %v72_v19 = vld [vmem:[#allocation5 + $0x38] sm:$0xff] }
  0x21   :  { %381 = vmatprep.subr.bf16.mxu0 %v87_v5  ;;  %412 = vmatprep.subr.bf16.mxu1 %v87_v5  ;;  %v61_v16 = vpack.c.bf16 %v50_v15, %v49_v14  ;;  %v84_v20 = vpack.c.bf16 %v72_v19, %v71_v18  ;;  %v69_v21 = vld [vmem:[#allocation5 + $0x20] sm:$0xff]  ;;  %v70_v22 = vld [vmem:[#allocation5 + $0x28] sm:$0xff]  ;;  %v67_v24 = vld [vmem:[#allocation5 + $0x10] sm:$0xff]  ;;  %p481_p13 = por %p480_p12, %p479_p11 }
  0x22   :  { %395 = vmatprep.mubr.bf16.mxu0 %v57_v13  ;;  %v83_v23 = vpack.c.bf16 %v70_v22, %v69_v21  ;;  %v68_v25 = vld [vmem:[#allocation5 + $0x18] sm:$0xff]  ;;  %v65_v27 = vld [vmem:[#allocation5] sm:$0xff]  ;;  %v66_v28 = vld [vmem:[#allocation5 + $0x8] sm:$0xff] }
  0x23   :  { %403 = vmatprep.mubr.bf16.mxu1 %v61_v16  ;;  %v82_v26 = vpack.c.bf16 %v68_v25, %v67_v24  ;;  %v81_v29 = vpack.c.bf16 %v66_v28, %v65_v27  ;;  %v43_v30 = vld [vmem:[#allocation2 + $0x10] sm:$0xff]  ;;  %v44_v31 = vld [vmem:[#allocation2 + $0x18] sm:$0xff]  ;;  %v45_v34 = vld [vmem:[#allocation2 + $0x20] sm:$0xff]  ;;  %p482_p0 = pnand %p481_p13, %p475_p10 }
  0x24   :  { %382 = vmatpush3.bf16.msra.mxu0 %v87_v5  ;;  %420 = vmatpush3.bf16.msra.mxu1 %v87_v5  ;;  %v51_v32 = vld [vmem:[#allocation2 + $0x50] sm:$0xff]  ;;  %v52_v33 = vld [vmem:[#allocation2 + $0x58] sm:$0xff]  ;;  %v46_v35 = vld [vmem:[#allocation2 + $0x28] sm:$0xff]  ;;  %v58_v38 = vpack.c.bf16 %v44_v31, %v43_v30 }
  0x25   :  { %383 = vmatprep.subr.bf16.mxu0 %v86_v8  ;;  %413 = vmatprep.subr.bf16.mxu1 %v86_v8  ;;  %v53_v36 = vld [vmem:[#allocation2 + $0x60] sm:$0xff]  ;;  %v54_v37 = vld [vmem:[#allocation2 + $0x68] sm:$0xff]  ;;  %v62_v39 = vpack.c.bf16 %v52_v33, %v51_v32  ;;  %v59_v40 = vpack.c.bf16 %v46_v35, %v45_v34  ;;  %v47_v42 = vld [vmem:[#allocation2 + $0x30] sm:$0xff] }
  0x26   :  { %v63_v41 = vpack.c.bf16 %v54_v37, %v53_v36  ;;  %v48_v43 = vld [vmem:[#allocation2 + $0x38] sm:$0xff]  ;;  %v55_v44 = vld [vmem:[#allocation2 + $0x70] sm:$0xff] }
  0x27   :  { %v56_v45 = vld [vmem:[#allocation2 + $0x78] sm:$0xff]  ;;  %v60_v46 = vpack.c.bf16 %v48_v43, %v47_v42 }
  0x28   :  { %384 = vmatpush3.bf16.msra.mxu0 %v86_v8  ;;  %421 = vmatpush3.bf16.msra.mxu1 %v86_v8  ;;  %v64_v47 = vpack.c.bf16 %v56_v45, %v55_v44 }
  0x29   :  { %385 = vmatprep.subr.bf16.mxu0 %v85_v17  ;;  %414 = vmatprep.subr.bf16.mxu1 %v85_v17 }
  0x2c   :  { %386 = vmatpush3.bf16.msra.mxu0 %v85_v17  ;;  %422 = vmatpush3.bf16.msra.mxu1 %v85_v17 }
  0x2d   :  { %387 = vmatprep.subr.bf16.mxu0 %v84_v20  ;;  %415 = vmatprep.subr.bf16.mxu1 %v84_v20 }
  0x30   :  { %388 = vmatpush3.bf16.msra.mxu0 %v84_v20  ;;  %423 = vmatpush3.bf16.msra.mxu1 %v84_v20 }
  0x31   :  { %389 = vmatprep.subr.bf16.mxu0 %v83_v23  ;;  %416 = vmatprep.subr.bf16.mxu1 %v83_v23 }
  0x34   :  { %390 = vmatpush3.bf16.msra.mxu0 %v83_v23  ;;  %424 = vmatpush3.bf16.msra.mxu1 %v83_v23 }
  0x35   :  { %391 = vmatprep.subr.bf16.mxu0 %v82_v26  ;;  %417 = vmatprep.subr.bf16.mxu1 %v82_v26 }
  0x38   :  { %392 = vmatpush3.bf16.msra.mxu0 %v82_v26  ;;  %425 = vmatpush3.bf16.msra.mxu1 %v82_v26 }
  0x39   :  { %393 = vmatprep.subr.bf16.mxu0 %v81_v29  ;;  %418 = vmatprep.subr.bf16.mxu1 %v81_v29 }
  0x3c   :  { %394 = vmatpush3.bf16.msra.mxu0 %v81_v29  ;;  %426 = vmatpush3.bf16.msra.mxu1 %v81_v29 }
  0x3f   :  { %396 = vmatmul.mubr.bf16.vlgmr.msra.gmra.mxu0 %v58_v38  ;;  %404 = vmatmul.mubr.bf16.vlgmr.msra.gmra.mxu1 %v62_v39 }
  0x40   :  { %399 = vmatprep.mubr.bf16.mxu0 %v59_v40  ;;  %407 = vmatprep.mubr.bf16.mxu1 %v63_v41 }
  0x47   :  { %400 = vmatmul.mubr.bf16.gmra.mxu0 %v60_v46  ;;  %408 = vmatmul.mubr.bf16.gmra.mxu1 %v64_v47 }
  0xff   :  { %v397_v48 = vpop.f32.mrf.mxu0  ;;  %v405_v49 = vpop.f32.mrf.mxu1 }
 0x101   :  { %v123_v50 = vpop.f32.mrf.mxu0  ;;  %v155_v51 = vpop.f32.mrf.mxu1 }
 0x103   :  { %v398_v52 = vpop.f32.mrf.mxu0  ;;  %v406_v53 = vpop.f32.mrf.mxu1 }
 0x104   :  { %v324_v54 = vpack.c.bf16 %v398_v52, %v397_v48  ;;  %v344_v55 = vpack.c.bf16 %v406_v53, %v405_v49 }
 0x105   :  { %v126_v56 = vpop.f32.mrf.mxu0  ;;  %v158_v57 = vpop.f32.mrf.mxu1 }
 0x106   :  { %356 = vst [vmem:[#allocation7 + $0x8] sm:$0xff] %v324_v54   ;;  %360 = vst [vmem:[#allocation7 + $0x28] sm:$0xff] %v344_v55   ;;  %v319_v58 = vpack.c.bf16 %v126_v56, %v123_v50  ;;  %v339_v59 = vpack.c.bf16 %v158_v57, %v155_v51 }
 0x107   :  { %v401_v60 = vpop.f32.mrf.mxu0  ;;  %v409_v61 = vpop.f32.mrf.mxu1 }
 0x108   :  { %320 = vst [vmem:[#allocation7] sm:$0xff] %v319_v58   ;;  %359 = vst [vmem:[#allocation7 + $0x20] sm:$0xff] %v339_v59  }
 0x109   :  { %v139_v62 = vpop.f32.mrf.mxu0  ;;  %v171_v63 = vpop.f32.mrf.mxu1 }
 0x10b   :  { %v402_v0 = vpop.f32.mrf.mxu0  ;;  %v410_v1 = vpop.f32.mrf.mxu1 }
 0x10c   :  { %v334_v2 = vpack.c.bf16 %v402_v0, %v401_v60  ;;  %v354_v3 = vpack.c.bf16 %v410_v1, %v409_v61 }
 0x10d   :  { %v142_v4 = vpop.f32.mrf.mxu0  ;;  %v174_v5 = vpop.f32.mrf.mxu1 }
 0x10e   :  { %358 = vst [vmem:[#allocation7 + $0x18] sm:$0xff] %v334_v2   ;;  %362 = vst [vmem:[#allocation7 + $0x38] sm:$0xff] %v354_v3   ;;  %v329_v6 = vpack.c.bf16 %v142_v4, %v139_v62  ;;  %v349_v7 = vpack.c.bf16 %v174_v5, %v171_v63 }
 0x110   :  { %357 = vst [vmem:[#allocation7 + $0x10] sm:$0xff] %v329_v6   ;;  %361 = vst [vmem:[#allocation7 + $0x30] sm:$0xff] %v349_v7  }
 0x111   :  { %485 = shalt.err (!%p482_p0)
}
 0x112   :  { %s505_s22 = smov 64   ;;  %s506_s23 = smov 4  }
 0x113   :  { %277 = dma.vmem_to_hbm [thread:$0]  %s272_s1, 1024, %s533_s2, [#allocation4], %s505_s22, %s505_s22, %s506_s23  }
 0x114   :  { %498 = dma.done.wait [#allocation4], 1024  }
 0x115   :  { %499 = vsyncadd [#allocation4], 4294966272 }
 0x116   :  { %281 = vsyncpa [#allocation3], 1 }
 0x117   :  { %282 = vsyncpa [#allocation6], 1 }
 0x118   :  { %283 = vsyncpa [#allocation4], 1 }

</bundles_post_ra>
